<compile_context>
chip_gen: v6e
topology: v6e:2x2x1
jax: 0.10.0
libtpu: 0.0.40
codegen_flags: <defaults>
</compile_context>

<pallas_src>
import jax
import jax.numpy as jnp
from jax.experimental import pallas as pl
from jax.experimental.pallas import tpu as pltpu

BATCH = 8
HIDDEN1 = 32     # feature dim seen by model1 head
HIDDEN3 = 32     # feature dim seen by model3 head
NUM_LOGITS = 2   # per sub-model (2 + 2 = 4 -> nn.Linear(4, 1))


def _ensemble_kernel(x1_ref, x3_ref, v1_ref, v3_ref, b_ref, out_ref):
    # x1_ref : [B, H1]  VMEM   (batch on sublanes, features on lanes)
    # x3_ref : [B, H3]  VMEM
    # v1_ref : [1, H1]  VMEM   (sublane-broadcast effective weights)
    # v3_ref : [1, H3]  VMEM
    # b_ref  : [1, 1]   SMEM   (folded scalar bias)
    # out    : [B, 1]   VMEM
    p1 = x1_ref[...] * v1_ref[...]                      # VPU, 1 vreg
    p3 = x3_ref[...] * v3_ref[...]                      # VPU, 1 vreg
    s1 = jnp.sum(p1, axis=-1, keepdims=True)            # XLU lane reduce -> [B, 1]
    s3 = jnp.sum(p3, axis=-1, keepdims=True)            # XLU lane reduce -> [B, 1]
    out_ref[...] = s1 + s3 + b_ref[0, 0]


def prepare_ensemble(params):
    """One-time fold of the frozen linear chain (constants per model)."""
    w1, b1, w3, b3, wc, bc = (params["w1"], params["b1"],
                              params["w3"], params["b3"],
                              params["wc"], params["bc"])
    f32 = jnp.float32
    wc1 = wc[:, :NUM_LOGITS]                              # [1, 2]
    wc3 = wc[:, NUM_LOGITS:]                              # [1, 2]
    v1 = (wc1 @ w1).astype(f32)                           # [1, H1]
    v3 = (wc3 @ w3).astype(f32)                           # [1, H3]
    b_eff = (wc1 @ b1.reshape(-1, 1)
             + wc3 @ b3.reshape(-1, 1)
             + bc.reshape(1, 1)).astype(f32)              # [1, 1]
    return {"v1": v1, "v3": v3, "b_eff": b_eff}


@jax.jit
def ensemble_forward(x1, x3, folded):
    """Fused forward: frozen heads + ensemble Linear(4, 1) -> [batch]."""
    batch = x1.shape[0]
    f32 = jnp.float32
    x1 = x1.astype(f32)
    x3 = x3.astype(f32)

    vmem = pl.BlockSpec(memory_space=pltpu.MemorySpace.VMEM)
    smem = pl.BlockSpec(memory_space=pltpu.MemorySpace.SMEM)

    out = pl.pallas_call(
        _ensemble_kernel,
        out_shape=jax.ShapeDtypeStruct((batch, 1), f32),
        in_specs=[vmem, vmem, vmem, vmem, smem],
        out_specs=vmem,
    )(x1, x3, folded["v1"], folded["v3"], folded["b_eff"])
    # combined_logits.squeeze(1)
    return out[:, 0]


def init_params(key):
    k1, k2, k3, k4, k5, k6 = jax.random.split(key, 6)
    # Frozen sub-model heads (synthetic stand-ins for model1 / model3 .logits).
    w1 = jax.random.normal(k1, (NUM_LOGITS, HIDDEN1), jnp.float32) * 0.05
    b1 = jax.random.normal(k2, (NUM_LOGITS,), jnp.float32) * 0.01
    w3 = jax.random.normal(k3, (NUM_LOGITS, HIDDEN3), jnp.float32) * 0.05
    b3 = jax.random.normal(k4, (NUM_LOGITS,), jnp.float32) * 0.01
    # self.linear = nn.Linear(4, 1)
    wc = jax.random.normal(k5, (1, 2 * NUM_LOGITS), jnp.float32) * 0.5
    bc = jax.random.normal(k6, (1,), jnp.float32) * 0.1
    return {"w1": w1, "b1": b1, "w3": w3, "b3": b3, "wc": wc, "bc": bc}


def reference_forward(x1, x3, p):
    logits1 = x1 @ p["w1"].T + p["b1"]
    logits3 = x3 @ p["w3"].T + p["b3"]
    combined = jnp.concatenate([logits1, logits3], axis=1) @ p["wc"].T + p["bc"]
    return combined[:, 0]


if __name__ == "__main__":
    key = jax.random.PRNGKey(0)
    kx1, kx2, kp = jax.random.split(key, 3)
    # Synthetic "encoded" inputs to the two frozen sub-model heads.
    # TODO(synk): the real model1/model3 are full transformer classifiers; here
    # only their final linear heads are represented.
    input_model1 = jax.random.normal(kx1, (BATCH, HIDDEN1), jnp.float32)
    input_model3 = jax.random.normal(kx2, (BATCH, HIDDEN3), jnp.float32)
    params = init_params(kp)

    folded = jax.tree_util.tree_map(jax.block_until_ready,
                                    prepare_ensemble(params))  # one-time fold

    out = ensemble_forward(input_model1, input_model3, folded)
    jax.block_until_ready(out)

    ref = reference_forward(input_model1, input_model3, params)
    assert out.shape == (BATCH,), out.shape
    assert jnp.allclose(out, ref, atol=1e-5, rtol=1e-5), (out, ref)
    print("KERNEL_OK")
</pallas_src>

<mosaic_0001>
module attributes {stable_mosaic.version = 11 : i64} {
  func.func @_ensemble_kernel(%arg0: memref<8x32xf32, #tpu.memory_space<vmem>>, %arg1: memref<8x32xf32, #tpu.memory_space<vmem>>, %arg2: memref<1x32xf32, #tpu.memory_space<vmem>>, %arg3: memref<1x32xf32, #tpu.memory_space<vmem>>, %arg4: memref<1x1xf32, #tpu.memory_space<smem>>, %arg5: memref<8x1xf32, #tpu.memory_space<vmem>>) attributes {dimension_semantics = [], scalar_prefetch = 0 : i64, scratch_operands = 0 : i64, tpu.core_type = #tpu.core_type<tc>} {
    %c0 = arith.constant 0 : index
    %c0_0 = arith.constant 0 : index
    %0 = vector.load %arg0[%c0, %c0_0] : memref<8x32xf32, #tpu.memory_space<vmem>>, vector<8x32xf32>
    %c0_1 = arith.constant 0 : index
    %c0_2 = arith.constant 0 : index
    %1 = vector.load %arg2[%c0_1, %c0_2] : memref<1x32xf32, #tpu.memory_space<vmem>>, vector<1x32xf32>
    %2 = vector.broadcast %1 : vector<1x32xf32> to vector<8x32xf32>
    %3 = arith.mulf %0, %2 : vector<8x32xf32>
    %c0_3 = arith.constant 0 : index
    %c0_4 = arith.constant 0 : index
    %4 = vector.load %arg1[%c0_3, %c0_4] : memref<8x32xf32, #tpu.memory_space<vmem>>, vector<8x32xf32>
    %c0_5 = arith.constant 0 : index
    %c0_6 = arith.constant 0 : index
    %5 = vector.load %arg3[%c0_5, %c0_6] : memref<1x32xf32, #tpu.memory_space<vmem>>, vector<1x32xf32>
    %6 = vector.broadcast %5 : vector<1x32xf32> to vector<8x32xf32>
    %7 = arith.mulf %4, %6 : vector<8x32xf32>
    %cst = arith.constant dense<0.000000e+00> : vector<8xf32>
    %8 = vector.multi_reduction <add>, %3, %cst [1] : vector<8x32xf32> to vector<8xf32>
    %9 = vector.shape_cast %8 : vector<8xf32> to vector<8x1xf32>
    %cst_7 = arith.constant dense<0.000000e+00> : vector<8xf32>
    %10 = vector.multi_reduction <add>, %7, %cst_7 [1] : vector<8x32xf32> to vector<8xf32>
    %11 = vector.shape_cast %10 : vector<8xf32> to vector<8x1xf32>
    %12 = arith.addf %9, %11 : vector<8x1xf32>
    %c0_8 = arith.constant 0 : index
    %c0_9 = arith.constant 0 : index
    %13 = memref.load %arg4[%c0_8, %c0_9] : memref<1x1xf32, #tpu.memory_space<smem>>
    %14 = vector.broadcast %13 : f32 to vector<8x1xf32>
    %15 = arith.addf %12, %14 : vector<8x1xf32>
    %c0_10 = arith.constant 0 : index
    %c0_11 = arith.constant 0 : index
    %16 = vector.load %arg5[%c0_10, %c0_11] : memref<8x1xf32, #tpu.memory_space<vmem>>, vector<8x1xf32>
    tpu.vector_store %arg5[%c0_10, %c0_11], %15 {strides = array<i32>} : memref<8x1xf32, #tpu.memory_space<vmem>>, vector<8x1xf32>,
    return
  }
}

</mosaic_0001>

<bundles_post_ra>
// kernel: ensemble_forward.1
= control target key start
LH: loop header
LB: loop body
LE: loop exit
PB: predicated region body
PF: predicated region fallthrough
CT: control target
= control target key end

     0   :  { %11 = vsyncpa [#allocation4], 0  ;;  %s180_s0 = inlined_call_operand.hbm [shape: f32[8,32], index: 0, kind: input, shape index: {}]   ;;  %s181_s1 = inlined_call_operand.hbm [shape: f32[8,32], index: 1, kind: input, shape index: {}]   ;;  %s182_s2 = inlined_call_operand.vmem [shape: f32[1,32], index: 2, kind: input, shape index: {}]   ;;  %s183_s3 = inlined_call_operand.vmem [shape: f32[1,32], index: 3, kind: input, shape index: {}]   ;;  %s184_s4 = inlined_call_operand.<no memory space> [shape: f32[1,1], index: 4, kind: input, shape index: {}]   ;;  %s185_s5 = inlined_call_operand.vmem [shape: f32[8,1], index: 5, kind: output, shape index: {}]  }
   0x1   :  { %12 = vsyncpa [#allocation6], 0  ;;  %s130_s18 = smov [#allocation3]   ;;  %s131_s20 = smov [#allocation5]  }
   0x2   :  { %s19_s19 = sshll.u32 %s130_s18, 4  ;;  %s29_s21 = sshll.u32 %s131_s20, 4  ;;  %s20_s19 = int_to_ptr.vmem [resolvable:$true] %s19_s19  ;;  %s30_s21 = int_to_ptr.vmem [resolvable:$true] %s29_s21 }
   0x3   :  { %s94_s22 = scalar_lea.vmem %s20_s19, 128  ;;  %p99_p1 = scmp.lt.s32.totalorder %s20_s19, %s20_s19 }
   0x4   :  { %p95_p0 = scmp.ne.s32.totalorder %s20_s19, %s94_s22  ;;  %p100_p2 = scmp.lt.s32.totalorder %s94_s22, %s94_s22 }
   0x6   :  { %p101_p3 = por %p100_p2, %p99_p1 }
   0x8   :  { %p102_p4 = pnand %p101_p3, %p95_p0 }
   0xa   :  { %105 = shalt.err (!%p102_p4)
}
   0xb   :  { %22 = dma.hbm_to_vmem [thread:$0]  %s180_s0, 128, %s20_s19, [#allocation4]  }
   0xc   :  { %s114_s25 = scalar_lea.vmem %s30_s21, 128  ;;  %p119_p6 = scmp.lt.s32.totalorder %s30_s21, %s30_s21 }
   0xd   :  { %p115_p5 = scmp.ne.s32.totalorder %s30_s21, %s114_s25  ;;  %p120_p7 = scmp.lt.s32.totalorder %s114_s25, %s114_s25 }
   0xf   :  { %p121_p8 = por %p120_p7, %p119_p6 }
  0x11   :  { %p122_p9 = pnand %p121_p8, %p115_p5 }
  0x13   :  { %125 = shalt.err (!%p122_p9)
}
  0x14   :  { %32 = dma.hbm_to_vmem [thread:$0]  %s181_s1, 128, %s30_s21, [#allocation6]  }
  0x15   :  { %126 = dma.done.wait [#allocation4], 128  }
  0x16   :  { %127 = vsyncadd [#allocation4], 4294967168 }
  0x17   :  { %128 = dma.done.wait [#allocation6], 128  }
  0x18   :  { %129 = vsyncadd [#allocation6], 4294967168  ;;  %v45_v0 = vld [vmem:[#allocation3] sm:$0xff]  ;;  %vm63_vm0 = vcmask 261120   ;;  %v54_v2 = vld [vmem:[#allocation5] sm:$0xff]  ;;  %v72_v9 = vstv %s184_s4  ;;  %vm74_vm1 = vcmask 7168  }
  0x19   :  { %v82_v1 = vld [vmem:[%s182_s2] ss:$0 sm:$0xff] }
  0x1a   :  { %v53_v3 = vmul.f32 %v82_v1, %v45_v0  ;;  %v83_v4 = vld [vmem:[%s183_s3] ss:$0 sm:$0xff] }
  0x1b   :  { %v62_v5 = vmul.f32 %v83_v4, %v54_v2 }
  0x1c   :  { %v64_v6 = vsel %vm63_vm0, %v53_v3, 0.0 }
  0x1d   :  { %65 = vadd.xlane.f32.xlu0 %v64_v6  ;;  %v67_v7 = vsel %vm63_vm0, %v62_v5, 0.0 }
  0x21   :  { %68 = vadd.xlane.f32.xlu0 %v67_v7 }
  0xa6   :  { %v66_v8 = vpop.xlane.xlu0 %65 }
  0xaa   :  { %v69_v10 = vpop.xlane.xlu0 %68 }
  0xab   :  { %v70_v11 = vadd.f32 %v69_v10, %v66_v8 }
  0xad   :  { %v73_v12 = vadd.f32 %v72_v9, %v70_v11 }
  0xaf   :  { %75 = vst.msk [vmem:[%s185_s5] sm:$0xff] %vm74_vm1, %v73_v12 }
  0xb0   :  { %80 = vsyncpa [#allocation4], 1 }
  0xb1   :  { %81 = vsyncpa [#allocation6], 1 }

</bundles_post_ra>
